<compile_context>
chip_gen: v7x
topology: tpu7x:2x2x1
jax: 0.10.0
libtpu: 0.0.40
codegen_flags: <defaults>
</compile_context>

<pallas_src>
import functools
import math

import jax
import jax.numpy as jnp
from jax.experimental import pallas as pl
from jax.experimental.pallas import tpu as pltpu


def _round_up(a: int, b: int) -> int:
    return (a + b - 1) // b * b


# ---------------------------------------------------------------------------
# Kernels
# ---------------------------------------------------------------------------
def _matmul_kernel(x_ref, w_ref, o_ref):
    """Eval path: o = x @ w, accumulated directly in the resident f32 output."""
    k = pl.program_id(2)

    @pl.when(k == 0)
    def _():
        o_ref[...] = jnp.zeros_like(o_ref)

    o_ref[...] += jnp.dot(x_ref[...], w_ref[...],
                          preferred_element_type=jnp.float32)


def _lsoftmax_train_kernel(x_ref, w_ref, xn_ref, wn_ref, tgt_ref, o_ref,
                           *, margin, beta, inv_one_plus_beta):
    """Train path: tiled matmul + large-margin rewrite of the target logits."""
    k = pl.program_id(2)
    nk = pl.num_programs(2)
    # program_id must be read at the top level of the kernel body (NOT inside a
    # pl.when body).  Hoist the global column offset of this class tile here.
    col_off = pl.program_id(0) * o_ref.shape[1]

    @pl.when(k == 0)
    def _():
        o_ref[...] = jnp.zeros_like(o_ref)

    o_ref[...] += jnp.dot(x_ref[...], w_ref[...],
                          preferred_element_type=jnp.float32)

    @pl.when(k == nk - 1)
    def _():
        logit = o_ref[...]                                   # (tm, tn) f32
        tm_b, tn_b = logit.shape
        tgt = tgt_ref[...]                                   # (tm, 1) int32

        # One-hot mask over the *global* class indices covered by this C tile.
        col = jax.lax.broadcasted_iota(jnp.int32, (tm_b, tn_b), 1) + col_off
        onehot = col == tgt                                  # (tm, tn)

        x_norm = xn_ref[...]                                 # (tm, 1) f32
        w_norm = wn_ref[...]                                 # (1, tn) f32

        logit_target = jnp.sum(jnp.where(onehot, logit, 0.0),
                               axis=1, keepdims=True)        # (tm, 1)
        w_target_norm = jnp.sum(jnp.where(onehot, w_norm, 0.0),
                                axis=1, keepdims=True)       # (tm, 1)

        denom = w_target_norm * x_norm + 1e-10
        cos_theta = logit_target / denom                     # exact divide

        # find_k without arccos: k = floor(arccos(c) / (pi/margin)) equals the
        # number of thresholds cos(n*pi/margin), n=1..margin-1, with c <= thr
        # (arccos is decreasing on [-1,1]).  Thresholds are trace-time consts.
        kk = jnp.zeros_like(cos_theta)
        sign_k = jnp.ones_like(cos_theta)
        for n in range(1, margin):
            ind = (cos_theta <= math.cos(n * math.pi / margin)).astype(jnp.float32)
            kk = kk + ind
            sign_k = sign_k * (1.0 - 2.0 * ind)              # (-1) ** k

        # NOTE: the PyTorch reference also computes calculate_cos_m_theta()
        # here but never uses it in the update -- dead code, omitted.
        upd = w_target_norm * x_norm * (sign_k * cos_theta - 2.0 * kk)
        upd_beta = (upd + beta * logit_target) * inv_one_plus_beta

        # Rows whose target class lives in another class tile have an
        # all-False mask and keep their plain logits.
        o_ref[...] = jnp.where(onehot, upd_beta, logit)


# ---------------------------------------------------------------------------
# Wrapper
# ---------------------------------------------------------------------------
def lsoftmax_linear_forward(x, weight, target=None, *, margin=4,
                            beta=100.0, beta_min=0.0, use_bf16=False,
                            block_m=256, block_n=512, block_k=512,
                            vmem_limit_bytes=None):
    """Forward pass of LSoftmaxLinear.

    training mode (target is not None): large-margin adjusted logits.
    eval mode   (target is None)      : plain x @ weight.

    Tile-size guidance:
      v5e : use_bf16=True, (tm,tn,tk) ~ (256, 512, 512), set vmem_limit_bytes
            (scoped default is only 16 MiB); 128-multiples match the 4x128^2 MXU.
      v6e : bf16 operands, (tm,tn,tk) ~ (512, 512-1024, 1024) with
            vmem_limit_bytes=64<<20; keep tn/tk multiples of 256 (2x256^2 MXU).
      v7x : 64 MiB physical VMEM per TC -- do NOT reuse v6e sizes; bf16 with
            (tm,tn,tk) ~ (256, 512, 512) and the class-leading grid below so
            the two TensorCores stream disjoint W column ranges.
    """
    # TODO(synk): the PyTorch module also decays self.beta *= self.scale after
    # each training forward; that mutable state stays with the caller here.
    B, D = x.shape
    D2, C = weight.shape
    assert D == D2
    if target is not None:
        assert target.shape == (B,)

    op_dtype = jnp.bfloat16 if use_bf16 else jnp.float32
    row_align = 16 if use_bf16 else 8

    # Lane-dense, MXU-aligned tiles; clamp to the (padded) problem size.
    tm = min(block_m, _round_up(B, row_align))
    tn = min(block_n, _round_up(C, 128))
    tk = min(block_k, _round_up(D, 128))
    Bp, Cp, Dp = _round_up(B, tm), _round_up(C, tn), _round_up(D, tk)

    def prep(a, rows, cols):
        out = a if a.dtype == op_dtype else a.astype(op_dtype)
        if out.shape != (rows, cols):
            out = jnp.pad(out, ((0, rows - out.shape[0]),
                                (0, cols - out.shape[1])))
        return out

    xp = prep(x, Bp, Dp)
    wp = prep(weight, Dp, Cp)

    # Class-tile axis leading: on v7x megacore the two TCs shard disjoint W
    # column ranges (W is the dominant operand); neutral on v5e/v6e.
    grid = (Cp // tn, Bp // tm, Dp // tk)
    cparams = pltpu.CompilerParams(
        dimension_semantics=("parallel", "parallel", "arbitrary"),
        vmem_limit_bytes=vmem_limit_bytes)

    x_spec = pl.BlockSpec((tm, tk), lambda j, i, k: (i, k))
    w_spec = pl.BlockSpec((tk, tn), lambda j, i, k: (k, j))
    o_spec = pl.BlockSpec((tm, tn), lambda j, i, k: (i, j))

    if target is None:
        out = pl.pallas_call(
            _matmul_kernel,
            out_shape=jax.ShapeDtypeStruct((Bp, Cp), jnp.float32),
            grid=grid,
            in_specs=[x_spec, w_spec],
            out_specs=o_spec,
            compiler_params=cparams,
        )(xp, wp)
        if (Bp, Cp) != (B, C):
            out = out[:B, :C]
        return out

    beta_eff = float(max(beta, beta_min))  # reference: max(self.beta, self.beta_min)

    # Norms in f32 from the ORIGINAL (un-cast) operands, computed once per
    # call instead of being re-reduced inside the kernel on every k step.
    x32 = x.astype(jnp.float32)
    w32 = weight.astype(jnp.float32)
    x_norm = jnp.sqrt(jnp.sum(x32 * x32, axis=1, keepdims=True))   # (B, 1)
    w_norm = jnp.sqrt(jnp.sum(w32 * w32, axis=0, keepdims=True))   # (1, C)
    if Bp != B:
        x_norm = jnp.pad(x_norm, ((0, Bp - B), (0, 0)))
    if Cp != C:
        w_norm = jnp.pad(w_norm, ((0, 0), (0, Cp - C)))

    tgt = target.astype(jnp.int32).reshape(B, 1)
    if Bp != B:
        tgt = jnp.pad(tgt, ((0, Bp - B), (0, 0)))

    kernel = functools.partial(_lsoftmax_train_kernel,
                               margin=int(margin), beta=beta_eff,
                               inv_one_plus_beta=1.0 / (1.0 + beta_eff))
    out = pl.pallas_call(
        kernel,
        out_shape=jax.ShapeDtypeStruct((Bp, Cp), jnp.float32),
        grid=grid,
        in_specs=[x_spec, w_spec,
                  pl.BlockSpec((tm, 1), lambda j, i, k: (i, 0)),   # ||x_row||
                  pl.BlockSpec((1, tn), lambda j, i, k: (0, j)),   # ||w_col||
                  pl.BlockSpec((tm, 1), lambda j, i, k: (i, 0))],  # target
        out_specs=o_spec,
        compiler_params=cparams,
    )(xp, wp, x_norm, w_norm, tgt)
    if (Bp, Cp) != (B, C):
        out = out[:B, :C]
    return out


# ---------------------------------------------------------------------------
# Pure-JAX reference (correctness check only)
# ---------------------------------------------------------------------------
def _reference_train(x, w, target, margin, beta=100.0):
    B = x.shape[0]
    logit = jnp.dot(x, w, precision=jax.lax.Precision.HIGHEST)
    rows = jnp.arange(B)
    logit_target = logit[rows, target]
    w_target_norm = jnp.linalg.norm(w[:, target], axis=0)
    x_norm = jnp.linalg.norm(x, axis=1)
    cos_theta = logit_target / (w_target_norm * x_norm + 1e-10)
    eps = 1e-7
    theta = jnp.arccos(jnp.clip(cos_theta, -1.0 + eps, 1.0 - eps))
    k = jnp.floor(theta / (math.pi / margin))
    sign_k = 1.0 - 2.0 * jnp.mod(k, 2.0)
    upd = w_target_norm * x_norm * (sign_k * cos_theta - 2.0 * k)
    updb = (upd + beta * logit_target) / (1.0 + beta)
    return logit.at[rows, target].set(updb)


# ---------------------------------------------------------------------------
if __name__ == "__main__":
    # Small shapes that still exercise the full tiling machinery:
    # 2 class tiles x 3 row tiles x 2 K tiles, with padding on both C and D.
    B, D, C, margin = 24, 192, 200, 4

    key = jax.random.PRNGKey(0)
    kx, kw, kt = jax.random.split(key, 3)
    x = jax.random.normal(kx, (B, D), jnp.float32)
    # deterministic stand-in for kaiming_normal_(weight.t()): std = sqrt(2/fan_in)
    weight = jax.random.normal(kw, (D, C), jnp.float32) * math.sqrt(2.0 / D)
    target = jax.random.randint(kt, (B,), 0, C, jnp.int32)

    out_train = lsoftmax_linear_forward(x, weight, target, margin=margin,
                                        block_m=8, block_n=128, block_k=128)
    out_eval = lsoftmax_linear_forward(x, weight, None, margin=margin,
                                       block_m=8, block_n=128, block_k=128)
    jax.block_until_ready((out_train, out_eval))

    ref_train = _reference_train(x, weight, target, margin)
    ref_eval = jnp.dot(x, weight, precision=jax.lax.Precision.HIGHEST)
    assert out_train.shape == (B, C) and out_eval.shape == (B, C)
    assert jnp.allclose(out_eval, ref_eval, atol=2e-3, rtol=2e-3), "eval mismatch"
    assert jnp.allclose(out_train, ref_train, atol=2e-3, rtol=2e-3), "train mismatch"

    print("KERNEL_OK")
</pallas_src>

<mosaic_0001>
module attributes {stable_mosaic.version = 11 : i64} {
  func.func @_lsoftmax_train_kernel(%arg0: i32, %arg1: i32, %arg2: i32, %arg3: memref<8x128xf32, #tpu.memory_space<vmem>>, %arg4: memref<128x128xf32, #tpu.memory_space<vmem>>, %arg5: memref<8x1xf32, #tpu.memory_space<vmem>>, %arg6: memref<1x128xf32, #tpu.memory_space<vmem>>, %arg7: memref<8x1xi32, #tpu.memory_space<vmem>>, %arg8: memref<8x128xf32, #tpu.memory_space<vmem>>) attributes {dimension_semantics = [#tpu.dimension_semantics<parallel>, #tpu.dimension_semantics<parallel>, #tpu.dimension_semantics<arbitrary>], iteration_bounds = array<i64: 2, 3, 2>, scalar_prefetch = 0 : i64, scratch_operands = 0 : i64, tpu.core_type = #tpu.core_type<tc>, window_params = [{transform_indices = @transform_0, window_bounds = array<i64: 8, 128>}, {transform_indices = @transform_1, window_bounds = array<i64: 128, 128>}, {transform_indices = @transform_2, window_bounds = array<i64: 8, 1>}, {transform_indices = @transform_3, window_bounds = array<i64: 1, 128>}, {transform_indices = @transform_4, window_bounds = array<i64: 8, 1>}, {transform_indices = @transform_5, window_bounds = array<i64: 8, 128>}]} {
    %c128_i32 = arith.constant 128 : i32
    %0 = arith.muli %arg0, %c128_i32 : i32
    %c0_i32 = arith.constant 0 : i32
    %1 = arith.cmpi eq, %arg2, %c0_i32 : i32
    %2 = arith.extui %1 : i1 to i32
    %c0_i32_0 = arith.constant 0 : i32
    %3 = arith.cmpi ne, %2, %c0_i32_0 : i32
    scf.if %3 {
      %cst_9 = arith.constant 0.000000e+00 : f32
      %13 = vector.broadcast %cst_9 : f32 to vector<8x128xf32>
      %c0_10 = arith.constant 0 : index
      %c0_11 = arith.constant 0 : index
      %14 = vector.load %arg8[%c0_10, %c0_11] : memref<8x128xf32, #tpu.memory_space<vmem>>, vector<8x128xf32>
      tpu.vector_store %arg8[%c0_10, %c0_11], %13 {strides = array<i32>} : memref<8x128xf32, #tpu.memory_space<vmem>>, vector<8x128xf32>,
    } else {
    }
    %c0 = arith.constant 0 : index
    %c0_1 = arith.constant 0 : index
    %4 = vector.load %arg8[%c0, %c0_1] : memref<8x128xf32, #tpu.memory_space<vmem>>, vector<8x128xf32>
    %c0_2 = arith.constant 0 : index
    %c0_3 = arith.constant 0 : index
    %5 = vector.load %arg3[%c0_2, %c0_3] : memref<8x128xf32, #tpu.memory_space<vmem>>, vector<8x128xf32>
    %c0_4 = arith.constant 0 : index
    %c0_5 = arith.constant 0 : index
    %6 = vector.load %arg4[%c0_4, %c0_5] : memref<128x128xf32, #tpu.memory_space<vmem>>, vector<128x128xf32>
    %cst = arith.constant dense<0.000000e+00> : vector<8x128xf32>
    %7 = tpu.matmul %5, %6, %cst {dimension_numbers = #tpu.dot_dimension_numbers<[1], [0], [0], [1], [0, 0, 1, 1], [], []>} : vector<8x128xf32>, vector<128x128xf32>, vector<8x128xf32> -> vector<8x128xf32>
    %8 = arith.addf %4, %7 : vector<8x128xf32>
    %c0_6 = arith.constant 0 : index
    %c0_7 = arith.constant 0 : index
    %9 = vector.load %arg8[%c0_6, %c0_7] : memref<8x128xf32, #tpu.memory_space<vmem>>, vector<8x128xf32>
    tpu.vector_store %arg8[%c0_6, %c0_7], %8 {strides = array<i32>} : memref<8x128xf32, #tpu.memory_space<vmem>>, vector<8x128xf32>,
    %c1_i32 = arith.constant 1 : i32
    %10 = arith.cmpi eq, %arg2, %c1_i32 : i32
    %11 = arith.extui %10 : i1 to i32
    %c0_i32_8 = arith.constant 0 : i32
    %12 = arith.cmpi ne, %11, %c0_i32_8 : i32
    scf.if %12 {
      %c0_9 = arith.constant 0 : index
      %c0_10 = arith.constant 0 : index
      %13 = vector.load %arg8[%c0_9, %c0_10] : memref<8x128xf32, #tpu.memory_space<vmem>>, vector<8x128xf32>
      %c0_11 = arith.constant 0 : index
      %c0_12 = arith.constant 0 : index
      %14 = vector.load %arg7[%c0_11, %c0_12] : memref<8x1xi32, #tpu.memory_space<vmem>>, vector<8x1xi32>
      %15 = tpu.iota {dimensions = array<i32: 1>} : vector<8x128xi32>
      %16 = vector.broadcast %0 : i32 to vector<8x128xi32>
      %17 = arith.addi %15, %16 : vector<8x128xi32>
      %18 = vector.broadcast %14 : vector<8x1xi32> to vector<8x128xi32>
      %19 = arith.cmpi eq, %17, %18 : vector<8x128xi32>
      %c0_13 = arith.constant 0 : index
      %c0_14 = arith.constant 0 : index
      %20 = vector.load %arg5[%c0_13, %c0_14] : memref<8x1xf32, #tpu.memory_space<vmem>>, vector<8x1xf32>
      %c0_15 = arith.constant 0 : index
      %c0_16 = arith.constant 0 : index
      %21 = vector.load %arg6[%c0_15, %c0_16] : memref<1x128xf32, #tpu.memory_space<vmem>>, vector<1x128xf32>
      %cst_17 = arith.constant 0.000000e+00 : f32
      %22 = vector.broadcast %cst_17 : f32 to vector<8x128xf32>
      %23 = arith.select %19, %13, %22 : vector<8x128xi1>, vector<8x128xf32>
      %cst_18 = arith.constant dense<0.000000e+00> : vector<8xf32>
      %24 = vector.multi_reduction <add>, %23, %cst_18 [1] : vector<8x128xf32> to vector<8xf32>
      %25 = vector.shape_cast %24 : vector<8xf32> to vector<8x1xf32>
      %cst_19 = arith.constant 0.000000e+00 : f32
      %26 = vector.shape_cast %21 : vector<1x128xf32> to vector<1x128xf32>
      %27 = vector.broadcast %26 : vector<1x128xf32> to vector<8x128xf32>
      %28 = vector.broadcast %cst_19 : f32 to vector<8x128xf32>
      %29 = arith.select %19, %27, %28 : vector<8x128xi1>, vector<8x128xf32>
      %cst_20 = arith.constant dense<0.000000e+00> : vector<8xf32>
      %30 = vector.multi_reduction <add>, %29, %cst_20 [1] : vector<8x128xf32> to vector<8xf32>
      %31 = vector.shape_cast %30 : vector<8xf32> to vector<8x1xf32>
      %32 = arith.mulf %31, %20 : vector<8x1xf32>
      %cst_21 = arith.constant 1.000000e-10 : f32
      %33 = vector.broadcast %cst_21 : f32 to vector<8x1xf32>
      %34 = arith.addf %32, %33 : vector<8x1xf32>
      %35 = arith.divf %25, %34 : vector<8x1xf32>
      %cst_22 = arith.constant 0.000000e+00 : f32
      %36 = vector.broadcast %cst_22 : f32 to vector<8x1xf32>
      %cst_23 = arith.constant 1.000000e+00 : f32
      %37 = vector.broadcast %cst_23 : f32 to vector<8x1xf32>
      %cst_24 = arith.constant 0.707106769 : f32
      %38 = vector.broadcast %cst_24 : f32 to vector<8x1xf32>
      %39 = arith.cmpf ole, %35, %38 : vector<8x1xf32>
      %40 = arith.extui %39 : vector<8x1xi1> to vector<8x1xi32>
      %41 = arith.sitofp %40 : vector<8x1xi32> to vector<8x1xf32>
      %42 = arith.addf %36, %41 : vector<8x1xf32>
      %cst_25 = arith.constant 2.000000e+00 : f32
      %43 = vector.broadcast %cst_25 : f32 to vector<8x1xf32>
      %44 = arith.mulf %43, %41 : vector<8x1xf32>
      %cst_26 = arith.constant 1.000000e+00 : f32
      %45 = vector.broadcast %cst_26 : f32 to vector<8x1xf32>
      %46 = arith.subf %45, %44 : vector<8x1xf32>
      %47 = arith.mulf %37, %46 : vector<8x1xf32>
      %cst_27 = arith.constant 6.12323426E-17 : f32
      %48 = vector.broadcast %cst_27 : f32 to vector<8x1xf32>
      %49 = arith.cmpf ole, %35, %48 : vector<8x1xf32>
      %50 = arith.extui %49 : vector<8x1xi1> to vector<8x1xi32>
      %51 = arith.sitofp %50 : vector<8x1xi32> to vector<8x1xf32>
      %52 = arith.addf %42, %51 : vector<8x1xf32>
      %cst_28 = arith.constant 2.000000e+00 : f32
      %53 = vector.broadcast %cst_28 : f32 to vector<8x1xf32>
      %54 = arith.mulf %53, %51 : vector<8x1xf32>
      %cst_29 = arith.constant 1.000000e+00 : f32
      %55 = vector.broadcast %cst_29 : f32 to vector<8x1xf32>
      %56 = arith.subf %55, %54 : vector<8x1xf32>
      %57 = arith.mulf %47, %56 : vector<8x1xf32>
      %cst_30 = arith.constant -0.707106769 : f32
      %58 = vector.broadcast %cst_30 : f32 to vector<8x1xf32>
      %59 = arith.cmpf ole, %35, %58 : vector<8x1xf32>
      %60 = arith.extui %59 : vector<8x1xi1> to vector<8x1xi32>
      %61 = arith.sitofp %60 : vector<8x1xi32> to vector<8x1xf32>
      %62 = arith.addf %52, %61 : vector<8x1xf32>
      %cst_31 = arith.constant 2.000000e+00 : f32
      %63 = vector.broadcast %cst_31 : f32 to vector<8x1xf32>
      %64 = arith.mulf %63, %61 : vector<8x1xf32>
      %cst_32 = arith.constant 1.000000e+00 : f32
      %65 = vector.broadcast %cst_32 : f32 to vector<8x1xf32>
      %66 = arith.subf %65, %64 : vector<8x1xf32>
      %67 = arith.mulf %57, %66 : vector<8x1xf32>
      %68 = arith.mulf %31, %20 : vector<8x1xf32>
      %69 = arith.mulf %67, %35 : vector<8x1xf32>
      %cst_33 = arith.constant 2.000000e+00 : f32
      %70 = vector.broadcast %cst_33 : f32 to vector<8x1xf32>
      %71 = arith.mulf %70, %62 : vector<8x1xf32>
      %72 = arith.subf %69, %71 : vector<8x1xf32>
      %73 = arith.mulf %68, %72 : vector<8x1xf32>
      %cst_34 = arith.constant 1.000000e+02 : f32
      %74 = vector.broadcast %cst_34 : f32 to vector<8x1xf32>
      %75 = arith.mulf %74, %25 : vector<8x1xf32>
      %76 = arith.addf %73, %75 : vector<8x1xf32>
      %cst_35 = arith.constant 9.900990e-03 : f32
      %77 = vector.broadcast %cst_35 : f32 to vector<8x1xf32>
      %78 = arith.mulf %76, %77 : vector<8x1xf32>
      %79 = vector.shape_cast %78 : vector<8x1xf32> to vector<8x1xf32>
      %80 = vector.broadcast %79 : vector<8x1xf32> to vector<8x128xf32>
      %81 = arith.select %19, %80, %13 : vector<8x128xi1>, vector<8x128xf32>
      %c0_36 = arith.constant 0 : index
      %c0_37 = arith.constant 0 : index
      %82 = vector.load %arg8[%c0_36, %c0_37] : memref<8x128xf32, #tpu.memory_space<vmem>>, vector<8x128xf32>
      tpu.vector_store %arg8[%c0_36, %c0_37], %81 {strides = array<i32>} : memref<8x128xf32, #tpu.memory_space<vmem>>, vector<8x128xf32>,
    } else {
    }
    return
  }
  func.func @transform_0(%arg0: i32, %arg1: i32, %arg2: i32) -> (i32, i32) {
    %c0_i32 = arith.constant 0 : i32
    return %arg1, %arg2 : i32, i32
  }
  func.func @transform_1(%arg0: i32, %arg1: i32, %arg2: i32) -> (i32, i32) {
    %c0_i32 = arith.constant 0 : i32
    return %arg2, %arg0 : i32, i32
  }
  func.func @transform_2(%arg0: i32, %arg1: i32, %arg2: i32) -> (i32, i32) {
    %c0_i32 = arith.constant 0 : i32
    %c0_i32_0 = arith.constant 0 : i32
    return %arg1, %c0_i32 : i32, i32
  }
  func.func @transform_3(%arg0: i32, %arg1: i32, %arg2: i32) -> (i32, i32) {
    %c0_i32 = arith.constant 0 : i32
    %c0_i32_0 = arith.constant 0 : i32
    return %c0_i32, %arg0 : i32, i32
  }
  func.func @transform_4(%arg0: i32, %arg1: i32, %arg2: i32) -> (i32, i32) {
    %c0_i32 = arith.constant 0 : i32
    %c0_i32_0 = arith.constant 0 : i32
    return %arg1, %c0_i32 : i32, i32
  }
  func.func @transform_5(%arg0: i32, %arg1: i32, %arg2: i32) -> (i32, i32) {
    %c0_i32 = arith.constant 0 : i32
    return %arg1, %arg0 : i32, i32
  }
}

</mosaic_0001>

<bundles_post_ra>
// kernel: tpu_custom_call.1
= control target key start
LH: loop header
LB: loop body
LE: loop exit
PB: predicated region body
PF: predicated region fallthrough
CT: control target
= control target key end

     0   :  { %s1426_s0 = inlined_call_operand.vmem [shape: f32[24,256], index: 0, kind: input, shape index: {}]   ;;  %s1427_s1 = inlined_call_operand.hbm [shape: f32[256,256], index: 1, kind: input, shape index: {}]   ;;  %s1428_s2 = inlined_call_operand.vmem [shape: f32[24,1], index: 2, kind: input, shape index: {}]   ;;  %s1429_s3 = inlined_call_operand.vmem [shape: f32[1,256], index: 3, kind: input, shape index: {}]   ;;  %s1430_s4 = inlined_call_operand.vmem [shape: s32[24,1], index: 4, kind: input, shape index: {}]   ;;  %s1431_s5 = inlined_call_operand.hbm [shape: f32[24,256], index: 5, kind: output, shape index: {}]  }
   0x1   :  { %1445 = sst [smem:[#allocation18_spill]] %s1426_s0 }
   0x2   :  { %1446 = sst [smem:[#allocation19_spill]] %s1427_s1 }
   0x3   :  { %1447 = sst [smem:[#allocation20_spill]] %s1429_s3 }
   0x4   :  { %1448 = sst [smem:[#allocation21_spill]] %s1431_s5 }
   0x5   :  { %10 = vsyncpa [#allocation3], 0 }
   0x6   :  { %12 = vsyncpa [#allocation3 + $0x1], 0 }
   0x7   :  { %13 = vsyncpa [#allocation4], 0 }
   0x8   :  { %15 = vsyncpa [#allocation4 + $0x1], 0  ;;  %s1114_s18 = smov 0   ;;  %s1116_s19 = smov 0  }
   0x9   :  { %s1118_s20 = smov 0   ;;  %s1120_s21 = smov 0  }
   0xa   :  { %s1122_s22 = smov 0   ;;  %s1124_s23 = smov 0  }
   0xb   :  { %s1126_s24 = smov 0   ;;  %s1128_s25 = smov 0  }
   0xc   :  { %s1130_s26 = smov 0   ;;  %s1132_s27 = smov 0  }
   0xd   :  { %s1134_s28 = smov 0   ;;  %s1136_s29 = smov 0  }
   0xe   :  { %s1138_s30 = smov 0  }
   0xf LB: > { %1449 = sst [smem:[#allocation8_spill]] %s1023_s18  ;;  %s668_s6 = sadd.s32 4294967295, %s1071_s30   ;;  %s1071_s30 = sphi %s1138_s30, %s21_s30   ;;  %s1067_s29 = sphi %s1136_s29, %s1482_s29   ;;  %s1063_s28 = sphi %s1134_s28, %s1481_s28   ;;  %s1059_s27 = sphi %s1132_s27, %s1480_s27   ;;  %s1055_s26 = sphi %s1130_s26, %s1479_s26   ;;  %s1051_s25 = sphi %s1128_s25, %s1478_s25   ;;  %s1047_s24 = sphi %s1126_s24, %s1477_s24   ;;  %s1043_s23 = sphi %s1124_s23, %s1488_s23   ;;  %s1039_s22 = sphi %s1122_s22, %s1487_s22   ;;  %s1035_s21 = sphi %s1120_s21, %s1486_s21   ;;  %s1031_s20 = sphi %s1118_s20, %s1485_s20   ;;  %s1027_s19 = sphi %s1116_s19, %s1484_s19   ;;  %s1023_s18 = sphi %s1114_s18, %s1483_s18  }
  0x10   : > { %1450 = sst [smem:[#allocation9_spill]] %s1043_s23  ;;  %s669_s7 = sadd.s32 4294967294, %s1071_s30  }
  0x11   : > { %1451 = sst [smem:[#allocation10_spill]] %s1059_s27  ;;  %s33_s8 = sadd.s32 1, %s1059_s27 }
  0x12   : > { %1452 = sst [smem:[#allocation11_spill]] %s1063_s28  ;;  %s36_s9 = sadd.s32 1, %s1063_s28 }
  0x13   : > { %1453 = sst [smem:[#allocation12_spill]] %s1067_s29  ;;  %p34_p0 = scmp.ge.s32.totalorder %s33_s8, 2 }
  0x14   : > { %s40_s10 = sadd.s32 1, %s1067_s29  ;;  %s77_s11 = sadd.s32 1, %s1043_s23 }
  0x15   : > { %p84_p1 = scmp.ne.s32.totalorder %s1043_s23, %s1039_s22  ;;  %s1490_s8 = smov (%p34_p0, %s33_s8), 0 }
  0x16   : > { %1454 = sst [smem:[#allocation13_spill]] %s1490_s8  ;;  %s1492_s9 = smov (!%p34_p0, %s36_s9), %s1063_s28 }
  0x17   : > { %s72_s12 = ssub.s32 %s1059_s27, %s1490_s8  ;;  %p85_p2 = scmp.eq.s32.totalorder %s1071_s30, 0 }
  0x18   : > { %p38_p3 = scmp.ge.s32.totalorder %s1492_s9, 3  ;;  %p90_p4 = scmp.ne.s32.totalorder %s1039_s22, %s1035_s21 }
  0x19   : > { %p1192_p5 = por %p85_p2, %p84_p1  ;;  %p91_p6 = scmp.eq.s32.totalorder %s668_s6, 0 }
  0x1a   : > { %s1494_s9 = smov (%p38_p3, %s1492_s9), 0  ;;  %s1496_s10 = smov (!%p38_p3, %s40_s10), %s1067_s29 }
  0x1b   : > { %1456 = sst [smem:[#allocation14_spill]] %s1494_s9  ;;  %p1199_p7 = por %p91_p6, %p90_p4 }
  0x1c   : > { %s178_s15 = ssub.s32 %s1063_s28, %s1494_s9  ;;  %p42_p8 = scmp.ge.s32.totalorder %s1496_s10, 2 }
  0x1d   : > { %s183_s16 = sadd.s32 1, %s1031_s20  ;;  %p193_p9 = scmp.ne.s32.totalorder %s1031_s20, %s1027_s19 }
  0x1e   : > { %p194_p10 = scmp.eq.s32.totalorder %s668_s6, 11  ;;  %s1498_s10 = smov (%p42_p8, %s1496_s10), 0 }
  0x1f   : > { %1458 = sst [smem:[#allocation15_spill]] %s1498_s10  ;;  %p199_p12 = scmp.ne.s32.totalorder %s1027_s19, %s1023_s18 }
  0x20   : > { %p1210_p11 = por %p194_p10, %p193_p9  ;;  %s73_s21 = ssub.s32 %s1067_s29, %s1498_s10 }
  0x21   : > { %p200_p13 = scmp.eq.s32.totalorder %s669_s7, 11  ;;  %s74_s9 = sor.u32 %s73_s21, %s72_s12 }
  0x22   : > { %s1459_s17 = scalar_select %p1210_p11, 1, 0 }
  0x23   : > { %s180_s8 = sor.u32 %s178_s15, %s73_s21  ;;  %p75_p0 = scmp.eq.s32.totalorder %s74_s9, 0 }
  0x24   : > { %1460 = sst [smem:[#allocation16_spill]] %s1459_s17  ;;  %p181_p1 = scmp.eq.s32.totalorder %s180_s8, 0 }
  0x25   : > { %p1218_p2 = por %p200_p13, %p199_p12  ;;  %p784_p3 = scmp.lt.s32.totalorder %s1071_s30, 12 }
  0x26   : > { %s1223_s6 = scalar_select %p75_p0, %s1043_s23, %s77_s11  }
  0x27   : > { %s1461_s28 = scalar_select %p1218_p2, 1, 0 }
  0x28   : > { %1462 = sst [smem:[#allocation17_spill]] %s1223_s6  ;;  %s231_s3 = sand.u32 1, %s1043_s23  }
  0x29   : > { %s1226_s5 = scalar_select %p181_p1, %s1031_s20, %s183_s16  }
  0x2a   : > { %s672_s0 = sshll.u32 %s231_s3, 7  ;;  %s695_s17 = sshll.u32 %s1059_s27, 5 }
  0x2b   : > { %s241_s18 = sadd.s32 %s1067_s29, %s695_s17  ;;  %s235_s10 = scalar_lea.vmem [#allocation2], %s672_s0 }
  0x2c   : > { %s244_s7 = sshll.u32 %s235_s10, 4  ;;  %s675_s12 = sshll.u32 %s241_s18, 7  ;;  %s1232_s7 = int_to_ptr.vmem [resolvable:$true] %s244_s7 }
  0x2d   : > { %s1463_s1 = sld [smem:[#allocation19_spill]]  ;;  %p1241_p4 = pnand %p784_p3, %p1192_p5 }
  0x2e   : > { %s1245_s0 = scalar_lea.sflag [#allocation3], %s231_s3 }
  0x2f   : > { %p905_p8 = pneg %p1241_p4 }
  0x33   : > { %s1237_s15 = scalar_lea.hbm %s1463_s1, %s675_s12  ;;  %s908_s16 = scalar_lea.hbm %s1463_s1, 8192 }
  0x34   : > { %s903_s18 = scalar_lea.hbm %s1237_s15, 2048  ;;  %p909_p5 = scmp.lt.u32.totalorder %s1237_s15, %s1463_s1 }
  0x35   : > { %p904_p6 = scmp.ne.s32.totalorder %s1237_s15, %s903_s18  ;;  %p910_p12 = scmp.lt.u32.totalorder %s908_s16, %s903_s18 }
  0x36   : > { %p912_p0 = scmp.lt.u32.totalorder %s903_s18, %s1237_s15 }
  0x37   : > { %p906_p9 = pnand %p905_p8, %p904_p6  ;;  %p911_p13 = por %p910_p12, %p909_p5 }
  0x39   : > { %p907_p10 = pneg %p906_p9  ;;  %p913_p1 = por %p912_p0, %p911_p13 }
  0x3b   : > { %p914_p3 = pnand %p913_p1, %p907_p10 }
  0x3d   : > { %917 = shalt.err (!%p914_p3)
}
  0x3e   : > { %s918_s3 = scalar_lea.vmem %s1232_s7, 2048  ;;  %s1073_s12 = smov [#allocation2]  }
  0x3f   : > { %p919_p6 = scmp.ne.s32.totalorder %s1232_s7, %s918_s3  ;;  %s923_s9 = sshll.u32 %s1073_s12, 4  ;;  %s924_s9 = int_to_ptr.vmem [resolvable:$false] %s923_s9 }
  0x40   : > { %s925_s8 = scalar_lea.vmem %s924_s9, 4096  ;;  %p926_p11 = scmp.lt.s32.totalorder %s1232_s7, %s924_s9 }
  0x41   : > { %p921_p9 = pnand %p919_p6, %p905_p8  ;;  %p927_p5 = scmp.lt.s32.totalorder %s925_s8, %s918_s3 }
  0x43   : > { %p922_p2 = pneg %p921_p9  ;;  %p928_p12 = por %p927_p5, %p926_p11 }
  0x45   : > { %p929_p13 = pnand %p928_p12, %p922_p2 }
  0x47   : > { %932 = shalt.err (!%p929_p13)
}
  0x48   : > { %s1074_s18 = smov 256   ;;  %s1075_s10 = smov 128  }
  0x49   : > { %s1076_s13 = smov 8   ;;  %p676_p8 = scmp.ge.s32.totalorder %s1071_s30, 1 }
  0x4a   : > { %779 = dma.hbm_to_vmem [thread:$0]  (!%p1241_p4), %s1237_s15, 2048, %s1232_s7, %s1245_s0, %s1074_s18, %s1075_s10, %s1076_s13  }
  0x4b   : > { %p272_p10 = scmp.lt.s32.totalorder %s1071_s30, 13 }
  0x4d   : > { %p273_p0 = pnand %p676_p8, %p272_p10 }
  0x4e   : > { %s278_s16 = sand.u32 (!%p273_p0), 1, %s1039_s22  }
  0x4f   : > { %276 = sbr.rel (%p273_p0) target bundleno = 686 (0x2ae), region = 40  ;;  %s677_s17 = sshll.u32 (!%p273_p0), %s278_s16, 7 }
  0x50   : > { %s279_s21 = scalar_lea.sflag (!%p273_p0), [#allocation3], %s278_s16  ;;  %s1276_s3 = scalar_lea.vmem (!%p273_p0), [#allocation2], %s677_s17 }
  0x56   : > { %1014 = dma.done.wait (%p1199_p7), %s279_s21, 2048  }
  0x57   : > { %1016 = vsyncadd (%p1199_p7), %s279_s21, 4294965248  ;;  %s1441_s7 = sand.u32 1, %s1027_s19   ;;  %p328_p11 = scmp.lt.s32.totalorder %s1051_s25, 2 }
  0x58   : > { %s678_s15 = sshll.u32 %s1441_s7, 3  ;;  %p330_p2 = scmp.lt.s32.totalorder %s1047_s24, 1 }
  0x59   : > { %p341_p4 = scmp.lt.s32.totalorder %s1055_s26, 1  ;;  %s1465_s29 = sld [smem:[#allocation18_spill]] }
  0x5a   : > { %s329_s11 = scalar_select %p328_p11, %s1051_s25, 2 }
  0x5b   : > { %s331_s0 = scalar_select %p330_p2, %s1047_s24, 1 }
  0x5c   : > { %s679_s12 = sshll.u32 %s329_s11, 1  ;;  %s681_s14 = sshll.u32 %s329_s11, 3 }
  0x5d   : > { %s333_s9 = sadd.s32 %s679_s12, %s331_s0  ;;  %s1293_s10 = scalar_lea.vmem %s1428_s2, %s681_s14 }
  0x5e   : > { %s680_s13 = sshll.u32 %s333_s9, 3  ;;  %s1298_s21 = scalar_lea.vmem %s1430_s4, %s681_s14 }
  0x5f   : > { %s1303_s27 = scalar_lea.vmem %s1465_s29, %s680_s13  ;;  %s683_s6 = sshll.u32 %s1055_s26, 7 }
  0x60   : > { %s1307_s23 = scalar_select %p341_p4, %s1055_s26, 1 }
  0x61   : > { %s1466_s12 = sld [smem:[#allocation20_spill]]  ;;  %s1313_s18 = scalar_lea.vmem [#allocation5], %s678_s15 }
  0x62   : > { %p684_p7 = scmp.ne.s32.totalorder %s1047_s24, 0 }
  0x63   : > { %v1077_v0 = vmov (!%p684_p7), 0.0  }
  0x64   : > { %352 = sbr.rel (%p684_p7) target bundleno = 107 (0x6b), region = 48  ;;  %353 = vst [vmem:[%s1313_s18] sm:$0xff] (!%p684_p7), %v1077_v0 }
  0x67   : > { %s343_s8 = scalar_lea.vmem %s1466_s12, %s1307_s23 }
  0x6b PF: > { %v356_v1 = vld [vmem:[%s1276_s3] sm:$0xff]  ;;  %v357_v2 = vld [vmem:[%s1276_s3 + $0x8] sm:$0xff]  ;;  %v358_v3 = vld [vmem:[%s1276_s3 + $0x10] sm:$0xff]  ;;  %v1078_v4 = vmov 0.0|0.0   ;;  %vm1079_vm0 = vmmov 0   ;;  %v1080_v7 = vmov 0.0  }
  0x6c   : > { %748 = vmatprep.subr.bf16.mxu0 %v1078_v4  ;;  %v749_v5 = vpack.c.bf16 %v357_v2, %v356_v1  ;;  %v359_v6 = vld [vmem:[%s1276_s3 + $0x18] sm:$0xff]  ;;  %745 = vmatprep.mubr.msk.f32.mxu0 %vm1079_vm0, %v1080_v7  ;;  %v360_v9 = vld [vmem:[%s1276_s3 + $0x20] sm:$0xff]  ;;  %v361_v10 = vld [vmem:[%s1276_s3 + $0x28] sm:$0xff]  ;;  %p685_p1 = scmp.ne.s32.totalorder %s1047_s24, 1 }
  0x6d   : > { %v752_v8 = vpack.c.bf16 %v359_v6, %v358_v3  ;;  %v755_v11 = vpack.c.bf16 %v361_v10, %v360_v9  ;;  %v362_v12 = vld [vmem:[%s1276_s3 + $0x30] sm:$0xff]  ;;  %v363_v13 = vld [vmem:[%s1276_s3 + $0x38] sm:$0xff]  ;;  %v364_v15 = vld [vmem:[%s1276_s3 + $0x40] sm:$0xff]  ;;  %v1081_v33 = vmov (!%p685_p1), 0   ;;  %v450_v34 = vlaneseq (!%p685_p1) }
  0x6e   : > { %750 = vmatpush3.bf16.msra.mxu0 %v749_v5  ;;  %v758_v14 = vpack.c.bf16 %v363_v13, %v362_v12  ;;  %v365_v16 = vld [vmem:[%s1276_s3 + $0x48] sm:$0xff]  ;;  %v366_v18 = vld [vmem:[%s1276_s3 + $0x50] sm:$0xff]  ;;  %v367_v19 = vld [vmem:[%s1276_s3 + $0x58] sm:$0xff]  ;;  %899 = vset.pattern.permute.xlu0 (!%p685_p1), %v1081_v33  ;;  %v452_v36 = vstv (!%p685_p1), %s683_s6  ;;  %v1082_v50 = vmov (!%p685_p1), 0.0  }
  0x6f   : > { %751 = vmatprep.subr.bf16.mxu0 %v1078_v4  ;;  %v761_v17 = vpack.c.bf16 %v365_v16, %v364_v15  ;;  %v764_v20 = vpack.c.bf16 %v367_v19, %v366_v18  ;;  %v368_v21 = vld [vmem:[%s1276_s3 + $0x60] sm:$0xff]  ;;  %v369_v22 = vld [vmem:[%s1276_s3 + $0x68] sm:$0xff]  ;;  %v370_v24 = vld [vmem:[%s1276_s3 + $0x70] sm:$0xff]  ;;  %900 = vset.pattern.permute.xlu1 (!%p685_p1), %v1081_v33  ;;  %v451_v35 = vand.u32 (!%p685_p1), 127, %v450_v34 }
  0x70   : > { %v767_v23 = vpack.c.bf16 %v369_v22, %v368_v21  ;;  %v371_v25 = vld [vmem:[%s1276_s3 + $0x78] sm:$0xff]  ;;  %v355_v27 = vld [vmem:[%s1303_s27] sm:$0xff] }
  0x71   : > { %v770_v26 = vpack.c.bf16 %v371_v25, %v370_v24  ;;  %v354_v28 = vld [vmem:[%s1313_s18] sm:$0xff]  ;;  %v453_v37 = vadd.s32 (!%p685_p1), %v452_v36, %v451_v35 }
  0x72   : > { %753 = vmatpush3.bf16.msra.mxu0 %v752_v8  ;;  %v449_v32 = vld [vmem:[%s1298_s21] sm:$0xff] (!%p685_p1) }
  0x73   : > { %754 = vmatprep.subr.bf16.mxu0 %v1078_v4  ;;  %455 = vperm.xlu0 (!%p685_p1), %899, %v449_v32   ;;  %v686_v38 = vld [vmem:[%s343_s8] ss:$0 sm:$0xff] (!%p685_p1) }
  0x74   : > { %v458_v43 = vld [vmem:[%s1293_s10] sm:$0xff] (!%p685_p1) }
  0x76   : > { %756 = vmatpush3.bf16.msra.mxu0 %v755_v11 }
  0x77   : > { %757 = vmatprep.subr.bf16.mxu0 %v1078_v4 }
  0x7a   : > { %759 = vmatpush3.bf16.msra.mxu0 %v758_v14 }
  0x7b   : > { %760 = vmatprep.subr.bf16.mxu0 %v1078_v4 }
  0x7e   : > { %762 = vmatpush3.bf16.msra.mxu0 %v761_v17 }
  0x7f   : > { %763 = vmatprep.subr.bf16.mxu0 %v1078_v4 }
  0x82   : > { %765 = vmatpush3.bf16.msra.mxu0 %v764_v20 }
  0x83   : > { %766 = vmatprep.subr.bf16.mxu0 %v1078_v4 }
  0x86   : > { %768 = vmatpush3.bf16.msra.mxu0 %v767_v23 }
  0x87   : > { %769 = vmatprep.subr.bf16.mxu0 %v1078_v4 }
  0x8a   : > { %771 = vmatpush3.bf16.msra.mxu0 %v770_v26 }
  0x8d   : > { %746 = vmatmul.mubr.f32.vlgmr.msra.gmra.mrb[0].mxu0 %v355_v27 }
  0xf2   : > { %v456_v40 = vpop.permute.xlu0 (!%p685_p1), %455 }
  0xf3   : > { %vm457_vm1 = vcmp.eq.s32.totalorder (!%p685_p1), %v453_v37, %v456_v40 }
  0xf4   : > { %v469_v41 = vsel (!%p685_p1), %vm457_vm1, %v686_v38, 0.0 }
  0xf5   : > { %470 = vadd.xlane.f32.xlu0 (!%p685_p1), %v469_v41 }
 0x15d   : > { %447 = sbr.rel (%p685_p1) target bundleno = 658 (0x292), region = 52 }
 0x160   : > { %v438_v29 = vpop.f32.mrb[0].mxu0 }
 0x161   : > { %v442_v30 = vadd.f32 %v438_v29, %v354_v28  ;;  %v747_v31 = vpop.f32.mrb[1].mxu0 }
 0x163   : > { %443 = vst [vmem:[%s1313_s18] sm:$0xff] %v442_v30 }
 0x16a   : > { %v448_v39 = vld [vmem:[%s1313_s18] sm:$0xff] }
 0x16b   : > { %v460_v42 = vsel %vm457_vm1, %v448_v39, 0.0 }
 0x16c   : > { %461 = vadd.xlane.f32.xlu1 %v460_v42 }
 0x182   : > { %v471_v44 = vpop.xlane.xlu0 %470 }
 0x183   : > { %v472_v45 = vmul.f32 %v471_v44, %v458_v43 }
 0x185   : > { %v473_v46 = vadd.f32 1e-10, %v472_v45 }
 0x187   : > { %901 = vrcp.f32 %v473_v46 }
 0x191   : > { %v902_v47 = vpop.eup %901 }
 0x1f9   : > { %v462_v48 = vpop.xlane.xlu1 %461 }
 0x1fa   : > { %v475_v49 = vmul.f32 %v902_v47, %v462_v48  ;;  %v500_v4 = vmul.f32 100.0, %v462_v48 }
 0x1fc   : > { %vm476_vm2 = vcmp.le.f32.partialorder %v475_v49, 0.70710677  ;;  %vm482_vm3 = vcmp.le.f32.partialorder %v475_v49, 6.123234e-17  ;;  %vm489_vm4 = vcmp.le.f32.partialorder %v475_v49, -0.70710677 }
 0x1fd   : > { %v687_v51 = vsel %vm476_vm2, 1.0, %v1082_v50  ;;  %v688_v52 = vsel %vm482_vm3, 1.0, %v1082_v50  ;;  %v689_v53 = vsel %vm489_vm4, 1.0, %v1082_v50 }
 0x1fe   : > { %v480_v54 = vmul.f32 2.0, %v687_v51  ;;  %v485_v55 = vadd.f32 %v688_v52, %v687_v51  ;;  %v486_v56 = vmul.f32 2.0, %v688_v52  ;;  %v493_v57 = vmul.f32 2.0, %v689_v53 }
 0x200   : > { %v481_v58 = vsub.f32 1.0, %v480_v54  ;;  %v487_v59 = vsub.f32 1.0, %v486_v56  ;;  %v492_v61 = vadd.f32 %v689_v53, %v485_v55  ;;  %v494_v62 = vsub.f32 1.0, %v493_v57 }
 0x202   : > { %v488_v60 = vmul.f32 %v487_v59, %v481_v58  ;;  %v497_v1 = vmul.f32 2.0, %v492_v61 }
 0x204   : > { %v495_v63 = vmul.f32 %v494_v62, %v488_v60 }
 0x206   : > { %v496_v0 = vmul.f32 %v495_v63, %v475_v49 }
 0x208   : > { %v498_v2 = vsub.f32 %v496_v0, %v497_v1 }
 0x20a   : > { %v499_v3 = vmul.f32 %v498_v2, %v472_v45 }
 0x20c   : > { %v501_v5 = vadd.f32 %v500_v4, %v499_v3 }
 0x20e   : > { %v502_v6 = vmul.f32 0.00990099, %v501_v5 }
 0x210   : > { %505 = vperm.xlu1 %900, %v502_v6  }
 0x28f   : > { %v506_v7 = vpop.permute.xlu1 %505 }
 0x290   : > { %v508_v8 = vsel %vm457_vm1, %v506_v7, %v448_v39 }
 0x291   : > { %509 = vst [vmem:[%s1313_s18] sm:$0xff] %v508_v8 }
 0x292 PF: > { %s1468_s23 = sld [smem:[#allocation16_spill]]  ;;  %s691_s24 = sshll.u32 %s1051_s25, 1 }
 0x293   : > { %s522_s6 = sadd.s32 %s1055_s26, %s691_s24  ;;  %s526_s3 = sshll.u32 %s1313_s18, 4  ;;  %s1354_s3 = int_to_ptr.vmem [resolvable:$true] %s526_s3 }
 0x294   : > { %s692_s7 = sshll.u32 %s522_s6, 7  ;;  %s1469_s9 = sld [smem:[#allocation21_spill]] }
 0x295   : > { %s1470_s13 = sand.u32 1, %s1027_s19   ;;  %s933_s17 = scalar_lea.vmem %s1354_s3, 128 }
 0x296   : > { %s511_s16 = scalar_lea.sflag [#allocation4], %s1470_s13  ;;  %p934_p3 = scmp.ne.s32.totalorder %s1354_s3, %s933_s17 }
 0x297   : > { %s1083_s25 = smov [#allocation5]  }
 0x298   : > { %p1471_p6 = scmp.ne.s32.totalorder %s1468_s23, 0  ;;  %s937_s26 = sshll.u32 %s1083_s25, 4  ;;  %s938_s26 = int_to_ptr.vmem [resolvable:$false] %s937_s26 }
 0x299   : > { %s939_s21 = scalar_lea.vmem %s938_s26, 256  ;;  %p940_p12 = scmp.lt.s32.totalorder %s1354_s3, %s938_s26 }
 0x29a   : > { %s524_s10 = scalar_lea.hbm %s1469_s9, %s692_s7  ;;  %p935_p9 = pnand %p934_p3, %p1471_p6 }
 0x29b   : > { %p941_p13 = scmp.lt.s32.totalorder %s939_s21, %s933_s17 }
 0x29c   : > { %p936_p5 = pneg %p935_p9 }
 0x29d   : > { %p942_p8 = por %p941_p13, %p940_p12 }
 0x29f   : > { %p943_p10 = pnand %p942_p8, %p936_p5 }
 0x2a1   : > { %946 = shalt.err (!%p943_p10)
}
 0x2a2   : > { %s947_s11 = scalar_lea.hbm %s524_s10, 128  ;;  %s951_s8 = scalar_lea.hbm %s1469_s9, 768 }
 0x2a3   : > { %p948_p0 = scmp.ne.s32.totalorder %s524_s10, %s947_s11  ;;  %p952_p4 = scmp.lt.u32.totalorder %s524_s10, %s1469_s9 }
 0x2a4   : > { %p953_p7 = scmp.lt.u32.totalorder %s951_s8, %s947_s11  ;;  %p955_p3 = scmp.lt.u32.totalorder %s947_s11, %s524_s10 }
 0x2a5   : > { %p949_p11 = pnand %p948_p0, %p1471_p6 }
 0x2a6   : > { %p954_p1 = por %p953_p7, %p952_p4 }
 0x2a7   : > { %p950_p2 = pneg %p949_p11 }
 0x2a8   : > { %p956_p9 = por %p955_p3, %p954_p1 }
 0x2aa   : > { %p957_p5 = pnand %p956_p9, %p950_p2 }
 0x2ac   : > { %960 = shalt.err (!%p957_p5)
}
 0x2ad   : > { %774 = dma.vmem_to_hbm [thread:$0]  (%p1471_p6), %s1354_s3, 128, %s524_s10, %s511_s16  }
 0x2ae PF: > { %s1472_s27 = sld [smem:[#allocation8_spill]]  ;;  %p785_p12 = scmp.ge.s32.totalorder %s1071_s30, 2 }
 0x2af   : > { %p1473_p13 = scmp.ne.s32.totalorder %s1461_s28, 0 }
 0x2b1   : > { %p781_p8 = pnand %p785_p12, %p1473_p13 }
 0x2b4   : > { %s538_s29 = sand.u32 1, %s1472_s27  }
 0x2b5   : > { %s539_s24 = scalar_lea.sflag [#allocation4], %s538_s29 }
 0x2b6   : > { %1018 = dma.done.wait (!%p781_p8), %s539_s24, 128  }
 0x2b7   : > { %1020 = vsyncadd (!%p781_p8), %s539_s24, 4294967168  ;;  %s21_s30 = sadd.s32 1, %s1071_s30   ;;  %s1475_s23 = sld [smem:[#allocation9_spill]] }
 0x2b8   : > { %p1382_p10 = scmp.ge.s32.totalorder %s21_s30, 14   ;;  %s1476_s3 = sld [smem:[#allocation17_spill]] }
 0x2b9   : > { %s1477_s24 = sld [smem:[#allocation10_spill]]  ;;  %s1478_s25 = sld [smem:[#allocation11_spill]] }
 0x2ba   : > { %s1479_s26 = sld [smem:[#allocation12_spill]]  ;;  %s1480_s27 = sld [smem:[#allocation13_spill]] }
 0x2bb   : > { %s1481_s28 = sld [smem:[#allocation14_spill]]  ;;  %s1482_s29 = sld [smem:[#allocation15_spill]] }
 0x2bc   : > { %s1483_s18 = smov %s1027_s19  ;;  %s1484_s19 = smov %s1031_s20 }
 0x2bd   : > { %s1485_s20 = smov %s1226_s5  ;;  %s1486_s21 = smov %s1039_s22 }
 0x2be   : > { %s1487_s22 = smov %s1475_s23  ;;  %s1488_s23 = smov %s1476_s3 }
 0x2bf   :  { %20 = sbr.rel (!%p1382_p10) target bundleno = 15 (0xf), region = 105 }
 0x2c6   :  { %544 = vsyncpa [#allocation3], 1 }
 0x2c7   :  { %546 = vsyncpa [#allocation3 + $0x1], 1 }
 0x2c8   :  { %547 = vsyncpa [#allocation4], 1 }
 0x2c9   :  { %549 = vsyncpa [#allocation4 + $0x1], 1 }

</bundles_post_ra>
